<compile_context>
chip_gen: v7x
topology: tpu7x:2x2x1
jax: 0.10.0
libtpu: 0.0.40
codegen_flags: <defaults>
</compile_context>

<pallas_src>
import jax
import jax.numpy as jnp
from jax.experimental import pallas as pl
from jax.experimental.pallas import tpu as pltpu


# ------------------------------ Pallas kernel -------------------------------

def cam_fused_kernel(x_ref, w_ref, b_ref, wconst_ref, segsum_ref, spread_ref,
                     cmask_ref, out_ref):
    """Per-batch fused CAM forward.

    x_ref      : (1, dim, HW)   input activations
    w_ref      : (KC, dim)      1x1 conv weight with BN scale folded in
    b_ref      : (KC, 1)        folded conv+BN bias
    wconst_ref : (KC, HW)       wexp[j] = sum_c gmax[c] * wconst[c, j]
    segsum_ref : (HW, Q)        segment-sum matrix  [j // KC == q]
    spread_ref : (Q, HW)        spread matrix       [q == p % Q]
    cmask_ref  : (KC, HW)       row-select matrix   [c == p // Q]
    out_ref    : (1, dim, HW)   x * M
    """
    x = x_ref[0]                                                   # (dim, HW)

    # 1x1 conv (MXU) + folded BN affine + ReLU.
    f1 = jnp.maximum(
        jnp.dot(w_ref[...], x, preferred_element_type=jnp.float32)
        + b_ref[...], 0.0)                                         # (KC, HW)

    # Global max pool over spatial (stays in registers — never hits HBM).
    gmax = jnp.max(f1, axis=1, keepdims=True)                      # (KC, 1)

    # wexp[j] = wvec[j % KC] where wvec[c'] = S[c'//k] / (classes*k):
    # VPU lane-broadcast of the gmax column + sublane reduce (no M=1 matmul).
    wexp = jnp.sum(gmax * wconst_ref[...], axis=0, keepdims=True)  # (1, HW)

    # M2[c, q] = sum_{c'} f1[c, q*KC + c'] * wvec[c']  (segmented lane sum
    # realised as an MXU matmul with the constant 0/1 segment matrix).
    m2 = jnp.dot(f1 * wexp, segsum_ref[...],
                 preferred_element_type=jnp.float32)               # (KC, Q)

    # Scatter M2 back to the natural spatial order p = c*Q + q:
    # Mexp[c, p] = M2[c, p % Q];  Mrow[0, p] = Mexp[p // Q, p].
    mexp = jnp.dot(m2, spread_ref[...],
                   preferred_element_type=jnp.float32)             # (KC, HW)
    mrow = jnp.sum(cmask_ref[...] * mexp, axis=0, keepdims=True)   # (1, HW)

    # Modulate the input (sublane broadcast of the M row).
    out_ref[0] = x * mrow


# -------------------------------- wrapper ------------------------------------

def category_attention_block(x_nchw, params, classes, k, eps=1e-5):
    B, dim, H, W = x_nchw.shape
    KC = classes * k
    HW = H * W
    assert HW % KC == 0, "fused CAM kernel requires (classes*k) | (H*W)"
    Q = HW // KC
    dt = jnp.float32

    x = x_nchw.reshape(B, dim, HW).astype(dt)

    # Fold conv bias + inference BatchNorm into the weight / bias:
    #   relu(W' @ x + b')  with  W' = (gamma/sqrt(var+eps)) * W.
    eff_scale = params["gamma"] / jnp.sqrt(params["running_var"] + eps)       # (KC,)
    eff_bias = (params["conv_b"] - params["running_mean"]) * eff_scale + params["beta"]
    w_fold = (eff_scale[:, None] * params["conv_w"]).astype(dt)               # (KC, dim)
    bias = eff_bias.reshape(KC, 1).astype(dt)                                 # (KC, 1)

    # Tiny constant selection matrices that let the kernel reproduce torch's
    # raw .view reinterpretation with matmuls / broadcasts only.
    cidx = jnp.arange(KC)
    jidx = jnp.arange(HW)
    qidx = jnp.arange(Q)
    w_const = ((cidx[:, None] // k) == ((jidx[None, :] % KC) // k)
               ).astype(dt) / float(classes * k * k)                          # (KC, HW)
    seg_sum = ((jidx[:, None] // KC) == qidx[None, :]).astype(dt)             # (HW, Q)
    spread = (qidx[:, None] == (jidx[None, :] % Q)).astype(dt)                # (Q, HW)
    c_mask = (cidx[:, None] == (jidx[None, :] // Q)).astype(dt)               # (KC, HW)

    out = pl.pallas_call(
        cam_fused_kernel,
        out_shape=jax.ShapeDtypeStruct((B, dim, HW), dt),
        grid_spec=pltpu.PrefetchScalarGridSpec(
            num_scalar_prefetch=0,
            grid=(B,),
            in_specs=[
                pl.BlockSpec((1, dim, HW), lambda b: (b, 0, 0)),
                pl.BlockSpec((KC, dim), lambda b: (0, 0)),
                pl.BlockSpec((KC, 1), lambda b: (0, 0)),
                pl.BlockSpec((KC, HW), lambda b: (0, 0)),
                pl.BlockSpec((HW, Q), lambda b: (0, 0)),
                pl.BlockSpec((Q, HW), lambda b: (0, 0)),
                pl.BlockSpec((KC, HW), lambda b: (0, 0)),
            ],
            out_specs=pl.BlockSpec((1, dim, HW), lambda b: (b, 0, 0)),
        ),
        compiler_params=pltpu.CompilerParams(
            dimension_semantics=("parallel",),   # v7x: one batch per TensorCore
        ),
    )(x, w_fold, bias, w_const, seg_sum, spread, c_mask)

    return out.reshape(B, dim, H, W)


# --------------------------- pure-JAX reference -----------------------------

def reference_forward(x, params, classes, k, eps=1e-5):
    B, dim, H, W = x.shape
    C = jnp.einsum("cd,bdhw->bchw", params["conv_w"], x) + params["conv_b"][None, :, None, None]
    Cbn = (params["gamma"][None, :, None, None]
           * (C - params["running_mean"][None, :, None, None])
           / jnp.sqrt(params["running_var"][None, :, None, None] + eps)
           + params["beta"][None, :, None, None])
    F1 = jnp.maximum(Cbn, 0.0)
    gmax = jnp.max(F1, axis=(2, 3))                               # (B, KC)
    S = gmax.reshape(B, 1, 1, classes, k).mean(-1)                # (B,1,1,classes)
    xv = F1.reshape(B, H, W, classes, k)                          # torch .view semantics
    xm = xv.mean(-1) * S                                          # (B,H,W,classes)
    M = xm.mean(-1, keepdims=True).reshape(B, 1, H, W)
    return x * M


# --------------------------------- main -------------------------------------

if __name__ == "__main__":
    B, dim, H, W = 2, 4, 16, 16
    classes, k = 4, 2
    KC = classes * k

    key = jax.random.PRNGKey(0)
    k1, k2, k3, k4, k5 = jax.random.split(key, 5)

    params = {
        "conv_w": jax.random.normal(k1, (KC, dim), jnp.float32) * 0.1,   # 1x1 conv weight
        "conv_b": jax.random.normal(k2, (KC,), jnp.float32) * 0.1,
        "gamma": 1.0 + 0.1 * jax.random.normal(k3, (KC,), jnp.float32),
        "beta": 0.1 * jax.random.normal(k4, (KC,), jnp.float32),
        "running_mean": jnp.zeros((KC,), jnp.float32),
        "running_var": jnp.ones((KC,), jnp.float32),
    }

    x = jax.random.normal(k5, (B, dim, H, W), jnp.float32)

    out = category_attention_block(x, params, classes, k)
    out = jax.block_until_ready(out)

    ref = reference_forward(x, params, classes, k)
    assert out.shape == (B, dim, H, W)
    assert jnp.allclose(out, ref, rtol=1e-5, atol=1e-5), "mismatch vs reference"

    print("KERNEL_OK")
</pallas_src>

<mosaic_0001>
module attributes {stable_mosaic.version = 11 : i64} {
  func.func @cam_fused_kernel(%arg0: i32, %arg1: memref<1x4x256xf32, #tpu.memory_space<vmem>>, %arg2: memref<8x4xf32, #tpu.memory_space<vmem>>, %arg3: memref<8x1xf32, #tpu.memory_space<vmem>>, %arg4: memref<8x256xf32, #tpu.memory_space<vmem>>, %arg5: memref<256x32xf32, #tpu.memory_space<vmem>>, %arg6: memref<32x256xf32, #tpu.memory_space<vmem>>, %arg7: memref<8x256xf32, #tpu.memory_space<vmem>>, %arg8: memref<1x4x256xf32, #tpu.memory_space<vmem>>) attributes {dimension_semantics = [#tpu.dimension_semantics<parallel>], iteration_bounds = array<i64: 2>, scalar_prefetch = 0 : i64, scratch_operands = 0 : i64, tpu.core_type = #tpu.core_type<tc>, window_params = [{transform_indices = @transform_0, window_bounds = array<i64: 1, 4, 256>}, {pipeline_mode = #tpu.pipeline_mode<synchronous>, transform_indices = @transform_1, window_bounds = array<i64: 8, 4>}, {pipeline_mode = #tpu.pipeline_mode<synchronous>, transform_indices = @transform_2, window_bounds = array<i64: 8, 1>}, {pipeline_mode = #tpu.pipeline_mode<synchronous>, transform_indices = @transform_3, window_bounds = array<i64: 8, 256>}, {pipeline_mode = #tpu.pipeline_mode<synchronous>, transform_indices = @transform_4, window_bounds = array<i64: 256, 32>}, {pipeline_mode = #tpu.pipeline_mode<synchronous>, transform_indices = @transform_5, window_bounds = array<i64: 32, 256>}, {pipeline_mode = #tpu.pipeline_mode<synchronous>, transform_indices = @transform_6, window_bounds = array<i64: 8, 256>}, {transform_indices = @transform_7, window_bounds = array<i64: 1, 4, 256>}]} {
    %c0 = arith.constant 0 : index
    %c0_0 = arith.constant 0 : index
    %c0_1 = arith.constant 0 : index
    %0 = vector.load %arg1[%c0, %c0_0, %c0_1] : memref<1x4x256xf32, #tpu.memory_space<vmem>>, vector<1x4x256xf32>
    %1 = vector.shape_cast %0 : vector<1x4x256xf32> to vector<4x256xf32>
    %c0_2 = arith.constant 0 : index
    %c0_3 = arith.constant 0 : index
    %2 = vector.load %arg2[%c0_2, %c0_3] : memref<8x4xf32, #tpu.memory_space<vmem>>, vector<8x4xf32>
    %cst = arith.constant dense<0.000000e+00> : vector<8x256xf32>
    %3 = tpu.matmul %2, %1, %cst {dimension_numbers = #tpu.dot_dimension_numbers<[1], [0], [0], [1], [0, 0, 1, 1], [], []>} : vector<8x4xf32>, vector<4x256xf32>, vector<8x256xf32> -> vector<8x256xf32>
    %c0_4 = arith.constant 0 : index
    %c0_5 = arith.constant 0 : index
    %4 = vector.load %arg3[%c0_4, %c0_5] : memref<8x1xf32, #tpu.memory_space<vmem>>, vector<8x1xf32>
    %5 = vector.broadcast %4 : vector<8x1xf32> to vector<8x256xf32>
    %6 = arith.addf %3, %5 : vector<8x256xf32>
    %cst_6 = arith.constant 0.000000e+00 : f32
    %7 = vector.broadcast %cst_6 : f32 to vector<8x256xf32>
    %8 = arith.maximumf %6, %7 : vector<8x256xf32>
    %cst_7 = arith.constant dense<0xFF800000> : vector<8xf32>
    %9 = vector.multi_reduction <maximumf>, %8, %cst_7 [1] : vector<8x256xf32> to vector<8xf32>
    %10 = vector.shape_cast %9 : vector<8xf32> to vector<8x1xf32>
    %c0_8 = arith.constant 0 : index
    %c0_9 = arith.constant 0 : index
    %11 = vector.load %arg4[%c0_8, %c0_9] : memref<8x256xf32, #tpu.memory_space<vmem>>, vector<8x256xf32>
    %12 = vector.broadcast %10 : vector<8x1xf32> to vector<8x256xf32>
    %13 = arith.mulf %12, %11 : vector<8x256xf32>
    %cst_10 = arith.constant dense<0.000000e+00> : vector<256xf32>
    %14 = vector.multi_reduction <add>, %13, %cst_10 [0] : vector<8x256xf32> to vector<256xf32>
    %15 = vector.shape_cast %14 : vector<256xf32> to vector<1x256xf32>
    %16 = vector.broadcast %15 : vector<1x256xf32> to vector<8x256xf32>
    %17 = arith.mulf %8, %16 : vector<8x256xf32>
    %c0_11 = arith.constant 0 : index
    %c0_12 = arith.constant 0 : index
    %18 = vector.load %arg5[%c0_11, %c0_12] : memref<256x32xf32, #tpu.memory_space<vmem>>, vector<256x32xf32>
    %cst_13 = arith.constant dense<0.000000e+00> : vector<8x32xf32>
    %19 = tpu.matmul %17, %18, %cst_13 {dimension_numbers = #tpu.dot_dimension_numbers<[1], [0], [0], [1], [0, 0, 1, 1], [], []>} : vector<8x256xf32>, vector<256x32xf32>, vector<8x32xf32> -> vector<8x32xf32>
    %c0_14 = arith.constant 0 : index
    %c0_15 = arith.constant 0 : index
    %20 = vector.load %arg6[%c0_14, %c0_15] : memref<32x256xf32, #tpu.memory_space<vmem>>, vector<32x256xf32>
    %cst_16 = arith.constant dense<0.000000e+00> : vector<8x256xf32>
    %21 = tpu.matmul %19, %20, %cst_16 {dimension_numbers = #tpu.dot_dimension_numbers<[1], [0], [0], [1], [0, 0, 1, 1], [], []>} : vector<8x32xf32>, vector<32x256xf32>, vector<8x256xf32> -> vector<8x256xf32>
    %c0_17 = arith.constant 0 : index
    %c0_18 = arith.constant 0 : index
    %22 = vector.load %arg7[%c0_17, %c0_18] : memref<8x256xf32, #tpu.memory_space<vmem>>, vector<8x256xf32>
    %23 = arith.mulf %22, %21 : vector<8x256xf32>
    %cst_19 = arith.constant dense<0.000000e+00> : vector<256xf32>
    %24 = vector.multi_reduction <add>, %23, %cst_19 [0] : vector<8x256xf32> to vector<256xf32>
    %25 = vector.shape_cast %24 : vector<256xf32> to vector<1x256xf32>
    %26 = vector.broadcast %25 : vector<1x256xf32> to vector<4x256xf32>
    %27 = arith.mulf %1, %26 : vector<4x256xf32>
    %c0_20 = arith.constant 0 : index
    %c0_21 = arith.constant 0 : index
    %c0_22 = arith.constant 0 : index
    %28 = vector.load %arg8[%c0_20, %c0_21, %c0_22] : memref<1x4x256xf32, #tpu.memory_space<vmem>>, vector<1x4x256xf32>
    %29 = vector.shape_cast %28 : vector<1x4x256xf32> to vector<4x256xf32>
    %30 = vector.shape_cast %27 : vector<4x256xf32> to vector<1x4x256xf32>
    tpu.vector_store %arg8[%c0_20, %c0_21, %c0_22], %30 {strides = array<i32>} : memref<1x4x256xf32, #tpu.memory_space<vmem>>, vector<1x4x256xf32>,
    return
  }
  func.func @transform_0(%arg0: i32) -> (i32, i32, i32) {
    %c0_i32 = arith.constant 0 : i32
    %c0_i32_0 = arith.constant 0 : i32
    %c0_i32_1 = arith.constant 0 : i32
    return %arg0, %c0_i32, %c0_i32_0 : i32, i32, i32
  }
  func.func @transform_1(%arg0: i32) -> (i32, i32) {
    %c0_i32 = arith.constant 0 : i32
    %c0_i32_0 = arith.constant 0 : i32
    %c0_i32_1 = arith.constant 0 : i32
    return %c0_i32, %c0_i32_0 : i32, i32
  }
  func.func @transform_2(%arg0: i32) -> (i32, i32) {
    %c0_i32 = arith.constant 0 : i32
    %c0_i32_0 = arith.constant 0 : i32
    %c0_i32_1 = arith.constant 0 : i32
    return %c0_i32, %c0_i32_0 : i32, i32
  }
  func.func @transform_3(%arg0: i32) -> (i32, i32) {
    %c0_i32 = arith.constant 0 : i32
    %c0_i32_0 = arith.constant 0 : i32
    %c0_i32_1 = arith.constant 0 : i32
    return %c0_i32, %c0_i32_0 : i32, i32
  }
  func.func @transform_4(%arg0: i32) -> (i32, i32) {
    %c0_i32 = arith.constant 0 : i32
    %c0_i32_0 = arith.constant 0 : i32
    %c0_i32_1 = arith.constant 0 : i32
    return %c0_i32, %c0_i32_0 : i32, i32
  }
  func.func @transform_5(%arg0: i32) -> (i32, i32) {
    %c0_i32 = arith.constant 0 : i32
    %c0_i32_0 = arith.constant 0 : i32
    %c0_i32_1 = arith.constant 0 : i32
    return %c0_i32, %c0_i32_0 : i32, i32
  }
  func.func @transform_6(%arg0: i32) -> (i32, i32) {
    %c0_i32 = arith.constant 0 : i32
    %c0_i32_0 = arith.constant 0 : i32
    %c0_i32_1 = arith.constant 0 : i32
    return %c0_i32, %c0_i32_0 : i32, i32
  }
  func.func @transform_7(%arg0: i32) -> (i32, i32, i32) {
    %c0_i32 = arith.constant 0 : i32
    %c0_i32_0 = arith.constant 0 : i32
    %c0_i32_1 = arith.constant 0 : i32
    return %arg0, %c0_i32, %c0_i32_0 : i32, i32, i32
  }
}

</mosaic_0001>

<bundles_post_ra>
// kernel: tpu_custom_call.1
= control target key start
LH: loop header
LB: loop body
LE: loop exit
PB: predicated region body
PF: predicated region fallthrough
CT: control target
= control target key end

     0   :  { %12 = vsyncpa [#allocation3], 0  ;;  %s1164_s0 = inlined_call_operand.vmem [shape: f32[2,4,256], index: 0, kind: input, shape index: {}]   ;;  %s1165_s1 = inlined_call_operand.vmem [shape: f32[8,4], index: 1, kind: input, shape index: {}]   ;;  %s1166_s2 = inlined_call_operand.vmem [shape: f32[8,1], index: 2, kind: input, shape index: {}]   ;;  %s1167_s3 = inlined_call_operand.vmem [shape: f32[8,256], index: 3, kind: input, shape index: {}]   ;;  %s1168_s4 = inlined_call_operand.vmem [shape: f32[256,32], index: 4, kind: input, shape index: {}]   ;;  %s1169_s5 = inlined_call_operand.vmem [shape: f32[32,256], index: 5, kind: input, shape index: {}]   ;;  %s1170_s6 = inlined_call_operand.vmem [shape: f32[8,256], index: 6, kind: input, shape index: {}]   ;;  %s1171_s7 = inlined_call_operand.hbm [shape: f32[2,4,256], index: 7, kind: output, shape index: {}]  }
   0x1   :  { %14 = vsyncpa [#allocation3 + $0x1], 0  ;;  %s914_s24 = smov 0   ;;  %s916_s25 = smov 0  }
   0x2   :  { %s918_s26 = smov 0   ;;  %s920_s27 = smov 0  }
   0x3 LB: > { %s935_s28 = sadd.s32 4294967295, %s869_s27   ;;  %s671_s29 = sadd.s32 4294967294, %s869_s27   ;;  %s869_s27 = sphi %s920_s27, %s1177_s27   ;;  %s865_s26 = sphi %s918_s26, %s1176_s26   ;;  %s861_s25 = sphi %s916_s25, %s1175_s25   ;;  %s857_s24 = sphi %s914_s24, %s1174_s24  }
   0x4   : > { %s939_s30 = sadd.s32 1, %s869_s27   ;;  %s179_s8 = sadd.s32 1, %s865_s26 }
   0x5   : > { %s176_s9 = ssub.s32 %s869_s27, %s939_s30  ;;  %p189_p0 = scmp.ne.s32.totalorder %s865_s26, %s861_s25 }
   0x6   : > { %p177_p1 = scmp.eq.s32.totalorder %s176_s9, 0  ;;  %p190_p2 = scmp.eq.s32.totalorder %s935_s28, 1 }
   0x7   : > { %p195_p3 = scmp.ne.s32.totalorder %s861_s25, %s857_s24  ;;  %p196_p4 = scmp.eq.s32.totalorder %s671_s29, 1 }
   0x8   : > { %s950_s10 = scalar_select %p177_p1, %s865_s26, %s179_s8  }
   0x9   : > { %p952_p5 = por %p190_p2, %p189_p0  ;;  %p956_p6 = por %p196_p4, %p195_p3 }
   0xa   : > { %p674_p7 = scmp.ge.s32.totalorder %s869_s27, 1  ;;  %p240_p8 = scmp.lt.s32.totalorder %s869_s27, 3 }
   0xc   : > { %p241_p9 = pnand %p674_p7, %p240_p8 }
   0xd   : > { %p272_p10 = scmp.lt.s32.totalorder (!%p241_p9), %s935_s28, 1  ;;  %v871_v0 = vmov (!%p241_p9), 0.0   ;;  %v872_v1 = vmov (!%p241_p9), 0   ;;  %v279_v2 = vld [vmem:[%s1166_s2] sm:$0xff] (!%p241_p9)  ;;  %vm291_vm0 = vcmask (!%p241_p9), 1043456   ;;  %vm287_vm1 = vcmask (!%p241_p9), 31744  }
   0xe   : > { %244 = sbr.rel (%p241_p9) target bundleno = 868 (0x364), region = 48  ;;  %360 = vmatprep.mubr.f32.mxu0 (!%p241_p9), %v871_v0  ;;  %805 = vset.pattern.permute.xlu0 (!%p241_p9), %v872_v1  ;;  %v278_v5 = vld [vmem:[%s1165_s1] sm:$0xff] (!%p241_p9)  ;;  %v407_v7 = vld [vmem:[%s1168_s4 + $0x88] sm:$0xff] (!%p241_p9)  ;;  %v408_v11 = vld [vmem:[%s1168_s4 + $0x90] sm:$0xff] (!%p241_p9)  ;;  %vm500_vm2 = vcmask (!%p241_p9), 261120   ;;  %s269_s9 = sand.u32 (!%p241_p9), 1, %s861_s25  }
   0xf   : > { %282 = vperm.xlu0 (!%p241_p9), %805, %v279_v2   ;;  %v406_v6 = vld [vmem:[%s1168_s4 + $0x80] sm:$0xff] (!%p241_p9)  ;;  %v391_v10 = vld [vmem:[%s1168_s4 + $0x8] sm:$0xff] (!%p241_p9)  ;;  %v409_v12 = vld [vmem:[%s1168_s4 + $0x98] sm:$0xff] (!%p241_p9)  ;;  %s675_s13 = sshll.u32 (!%p241_p9), %s269_s9, 3  ;;  %s688_s14 = sshll.u32 (!%p241_p9), %s935_s28, 7 }
  0x10   : > { %v390_v8 = vld [vmem:[%s1168_s4] sm:$0xff] (!%p241_p9)  ;;  %v724_v9 = vpack.c.bf16 (!%p241_p9), %v407_v7, %v406_v6  ;;  %v728_v14 = vpack.c.bf16 (!%p241_p9), %v409_v12, %v408_v11  ;;  %v392_v15 = vld [vmem:[%s1168_s4 + $0x10] sm:$0xff] (!%p241_p9)  ;;  %v393_v16 = vld [vmem:[%s1168_s4 + $0x18] sm:$0xff] (!%p241_p9)  ;;  %s598_s20 = scalar_lea.sflag (!%p241_p9), [#allocation3], %s269_s9 }
  0x11   : > { %v726_v13 = vpack.c.bf16 (!%p241_p9), %v391_v10, %v390_v8  ;;  %v410_v17 = vld [vmem:[%s1168_s4 + $0xa0] sm:$0xff] (!%p241_p9)  ;;  %v411_v18 = vld [vmem:[%s1168_s4 + $0xa8] sm:$0xff] (!%p241_p9)  ;;  %v730_v19 = vpack.c.bf16 (!%p241_p9), %v393_v16, %v392_v15  ;;  %v412_v23 = vld [vmem:[%s1168_s4 + $0xb0] sm:$0xff] (!%p241_p9) }
  0x12   : > { %725 = vmatprep.subr.bf16.mxu1 (!%p241_p9), %v724_v9  ;;  %v732_v20 = vpack.c.bf16 (!%p241_p9), %v411_v18, %v410_v17  ;;  %v394_v21 = vld [vmem:[%s1168_s4 + $0x20] sm:$0xff] (!%p241_p9)  ;;  %v395_v22 = vld [vmem:[%s1168_s4 + $0x28] sm:$0xff] (!%p241_p9)  ;;  %v413_v24 = vld [vmem:[%s1168_s4 + $0xb8] sm:$0xff] (!%p241_p9) }
  0x13   : > { %727 = vmatpush3.bf16.msra.mxu1 (!%p241_p9), %v726_v13  ;;  %v734_v25 = vpack.c.bf16 (!%p241_p9), %v395_v22, %v394_v21  ;;  %v736_v26 = vpack.c.bf16 (!%p241_p9), %v413_v24, %v412_v23  ;;  %v396_v27 = vld [vmem:[%s1168_s4 + $0x30] sm:$0xff] (!%p241_p9)  ;;  %v397_v28 = vld [vmem:[%s1168_s4 + $0x38] sm:$0xff] (!%p241_p9)  ;;  %v414_v38 = vld [vmem:[%s1168_s4 + $0xc0] sm:$0xff] (!%p241_p9) }
  0x14   : > { %729 = vmatprep.subr.bf16.mxu1 (!%p241_p9), %v728_v14  ;;  %v738_v29 = vpack.c.bf16 (!%p241_p9), %v397_v28, %v396_v27  ;;  %v415_v39 = vld [vmem:[%s1168_s4 + $0xc8] sm:$0xff] (!%p241_p9)  ;;  %v398_v41 = vld [vmem:[%s1168_s4 + $0x40] sm:$0xff] (!%p241_p9)  ;;  %v416_v44 = vld [vmem:[%s1168_s4 + $0xd0] sm:$0xff] (!%p241_p9) }
  0x15   : > { %s273_s15 = scalar_select %p272_p10, %s935_s28, 1  ;;  %v740_v40 = vpack.c.bf16 %v415_v39, %v414_v38  ;;  %v399_v42 = vld [vmem:[%s1168_s4 + $0x48] sm:$0xff]  ;;  %v417_v45 = vld [vmem:[%s1168_s4 + $0xd8] sm:$0xff]  ;;  %v400_v47 = vld [vmem:[%s1168_s4 + $0x50] sm:$0xff] }
  0x16   : > { %v742_v43 = vpack.c.bf16 %v399_v42, %v398_v41  ;;  %v744_v46 = vpack.c.bf16 %v417_v45, %v416_v44  ;;  %v401_v48 = vld [vmem:[%s1168_s4 + $0x58] sm:$0xff]  ;;  %v418_v50 = vld [vmem:[%s1168_s4 + $0xe0] sm:$0xff]  ;;  %v419_v51 = vld [vmem:[%s1168_s4 + $0xe8] sm:$0xff]  ;;  %s873_s28 = smov [#allocation2]  }
  0x17   : > { %s687_s16 = sshll.u32 %s273_s15, 3  ;;  %731 = vmatpush3.bf16.msra.mxu1 %v730_v19  ;;  %v746_v49 = vpack.c.bf16 %v401_v48, %v400_v47  ;;  %v748_v52 = vpack.c.bf16 %v419_v51, %v418_v50  ;;  %v402_v53 = vld [vmem:[%s1168_s4 + $0x60] sm:$0xff]  ;;  %v403_v54 = vld [vmem:[%s1168_s4 + $0x68] sm:$0xff]  ;;  %v420_v56 = vld [vmem:[%s1168_s4 + $0xf0] sm:$0xff]  ;;  %s271_s15 = scalar_lea.vmem [#allocation2], %s675_s13 }
  0x18   : > { %s276_s19 = scalar_lea.vmem %s1164_s0, %s687_s16  ;;  %733 = vmatprep.subr.bf16.mxu1 %v732_v20  ;;  %v750_v55 = vpack.c.bf16 %v403_v54, %v402_v53  ;;  %v421_v57 = vld [vmem:[%s1168_s4 + $0xf8] sm:$0xff]  ;;  %v404_v58 = vld [vmem:[%s1168_s4 + $0x70] sm:$0xff]  ;;  %v493_v62 = vld [vmem:[%s1169_s5 + $0x8] sm:$0xff]  ;;  %s612_s16 = sshll.u32 %s271_s15, 4  ;;  %s1124_s16 = int_to_ptr.vmem [resolvable:$true] %s612_s16 }
  0x19   : > { %v970_v3 = vld [vmem:[%s276_s19] sm:$0xff]  ;;  %v752_v59 = vpack.c.bf16 %v421_v57, %v420_v56  ;;  %v405_v60 = vld [vmem:[%s1168_s4 + $0x78] sm:$0xff]  ;;  %v494_v2 = vld [vmem:[%s1169_s5 + $0x10] sm:$0xff]  ;;  %s1122_s19 = scalar_lea.hbm %s1171_s7, %s688_s14  ;;  %s807_s21 = scalar_lea.vmem %s1124_s16, 128 }
  0x1a   : > { %v286_v4 = vcombine.high %v970_v3, %v970_v3  ;;  %v754_v61 = vpack.c.bf16 %v405_v60, %v404_v58  ;;  %v495_v63 = vld [vmem:[%s1169_s5 + $0x18] sm:$0xff]  ;;  %v373_v6 = vld [vmem:[%s1167_s3 + $0x8] sm:$0xff]  ;;  %v496_v27 = vld [vmem:[%s1169_s5 + $0x20] sm:$0xff]  ;;  %p808_p11 = scmp.ne.s32.totalorder %s1124_s16, %s807_s21  ;;  %s811_s22 = sshll.u32 %s873_s28, 4  ;;  %s812_s22 = int_to_ptr.vmem [resolvable:$false] %s811_s22 }
  0x1b   : > { %735 = vmatpush3.bf16.msra.mxu1 %v734_v25  ;;  %v756_v1 = vpack.c.bf16 %v495_v63, %v493_v62  ;;  %v497_v24 = vld [vmem:[%s1169_s5 + $0x28] sm:$0xff]  ;;  %v499_v25 = vld [vmem:[%s1169_s5 + $0x38] sm:$0xff]  ;;  %v498_v28 = vld [vmem:[%s1169_s5 + $0x30] sm:$0xff]  ;;  %s813_s23 = scalar_lea.vmem %s812_s22, 256  ;;  %p814_p0 = scmp.lt.s32.totalorder %s1124_s16, %s812_s22 }
  0x1c   : > { %678 = vmatprep.subr.msk.mxu0 %vm291_vm0, %v286_v4  ;;  %737 = vmatprep.subr.bf16.mxu1 %v736_v26  ;;  %v760_v26 = vpack.c.bf16 %v499_v25, %v497_v24  ;;  %p809_p12 = pnand %p808_p11, %p952_p5  ;;  %p815_p1 = scmp.lt.s32.totalorder %s813_s23, %s807_s21 }
  0x1d   : > { %679 = vmatpush1.msk.msra.mxu0 %vm291_vm0, %v970_v3 }
  0x1e   : > { %680 = vmatmul.mubr.msk.f32.vlgmr.msra.gmra.mrb[0].mxu0 %vm287_vm1, %v278_v5  ;;  %757 = vmatprep.subr.bf16.mxu0 %v756_v1  ;;  %v372_v5 = vld [vmem:[%s1167_s3] sm:$0xff]  ;;  %p810_p13 = pneg %p809_p12  ;;  %p816_p2 = por %p815_p1, %p814_p0 }
  0x1f   : > { %568 = vmatprep.mubr.f32.mxu0 %v871_v0  ;;  %739 = vmatpush3.bf16.msra.mxu1 %v738_v29  ;;  %v492_v0 = vld [vmem:[%s1169_s5] sm:$0xff]  ;;  %v762_v29 = vpack.c.bf16 %v498_v28, %v496_v27 }
  0x20   : > { %741 = vmatprep.subr.bf16.mxu1 %v740_v40  ;;  %v758_v4 = vpack.c.bf16 %v494_v2, %v492_v0  ;;  %p817_p3 = pnand %p816_p2, %p810_p13 }
  0x22   : > { %759 = vmatpush1.bf16.msra.mxu0 %v758_v4 }
  0x23   : > { %743 = vmatpush3.bf16.msra.mxu1 %v742_v43  ;;  %761 = vmatprep.subr.bf16.mxu0 %v760_v26 }
  0x24   : > { %745 = vmatprep.subr.bf16.mxu1 %v744_v46 }
  0x26   : > { %763 = vmatpush1.bf16.msra.mxu0 %v762_v29 }
  0x27   : > { %747 = vmatpush3.bf16.msra.mxu1 %v746_v49 }
  0x28   : > { %749 = vmatprep.subr.bf16.mxu1 %v748_v52 }
  0x2b   : > { %751 = vmatpush3.bf16.msra.mxu1 %v750_v55 }
  0x2c   : > { %753 = vmatprep.subr.bf16.mxu1 %v752_v59 }
  0x2f   : > { %755 = vmatpush3.bf16.msra.mxu1 %v754_v61 }
  0x8e   : > { %v283_v30 = vpop.permute.xlu0 %282 }
  0xf1   : > { %v362_v31 = vpop.f32.mrb[0].mxu0 }
  0xf2   : > { %v1026_v32 = vadd.f32 %v362_v31, %v283_v30  ;;  %v364_v33 = vpop.f32.mrb[1].mxu0 }
  0xf3   : > { %v1028_v34 = vadd.f32 %v364_v33, %v283_v30  ;;  %v575_v33 = vld [vmem:[%s1170_s6] sm:$0xff] }
  0xf4   : > { %v367_v35 = vmax.f32 %v1026_v32, 0.0 }
  0xf5   : > { %v368_v36 = vmax.f32 %v1028_v34, 0.0  ;;  %v576_v34 = vld [vmem:[%s1170_s6 + $0x8] sm:$0xff] }
  0xf7   : > { %v369_v37 = vmax.f32 %v367_v35, %v368_v36 }
  0xf9   : > { %370 = vmax.xlane.f32.xlu0 %v369_v37 }
 0x186   : > { %v371_v7 = vpop.xlane.xlu0 %370 }
 0x187   : > { %v374_v8 = vmul.f32 %v372_v5, %v371_v7  ;;  %v375_v9 = vmul.f32 %v373_v6, %v371_v7 }
 0x189   : > { %v376_v10 = vrot.slane %v374_v8, 4  ;;  %v382_v11 = vrot.slane %v375_v9, 4 }
 0x18b   : > { %v377_v12 = vadd.f32 %v376_v10, %v374_v8  ;;  %v383_v13 = vadd.f32 %v382_v11, %v375_v9 }
 0x18d   : > { %v378_v14 = vrot.slane %v377_v12, 2  ;;  %v384_v15 = vrot.slane %v383_v13, 2 }
 0x18f   : > { %v379_v16 = vadd.f32 %v378_v14, %v377_v12  ;;  %v385_v17 = vadd.f32 %v384_v15, %v383_v13 }
 0x191   : > { %v380_v18 = vrot.slane %v379_v16, 1  ;;  %v386_v19 = vrot.slane %v385_v17, 1 }
 0x193   : > { %v387_v20 = vadd.f32 %v386_v19, %v385_v17  ;;  %v381_v21 = vadd.f32 %v380_v18, %v379_v16 }
 0x195   : > { %v389_v22 = vmul.f32 %v387_v20, %v368_v36  ;;  %v388_v23 = vmul.f32 %v381_v21, %v367_v35 }
 0x197   : > { %486 = vmatprep.mubr.f32.mxu1 %v389_v22 }
 0x198   : > { %487 = vmatmul.mubr.f32.vlgmr.msra.gmra.mrb[0].mxu1 %v388_v23 }
 0x26b   : > { %v721_v30 = vpop.f32.mrb[0].mxu1 }
 0x26c   : > { %v722_v31 = vpop.f32.mrb[1].mxu1 }
 0x26d   : > { %v723_v32 = vadd.f32 %v722_v31, %v721_v30 }
 0x26f   : > { %681 = vmatmul.mubr.msk.f32.vlgmr.msra.gmra.mrb[2].mxu0 %vm500_vm2, %v723_v32 }
 0x342   : > { %v570_v35 = vpop.f32.mrb[2].mxu0 }
 0x343   : > { %v577_v36 = vmul.f32 %v575_v33, %v570_v35  ;;  %v572_v37 = vpop.f32.mrb[3].mxu0 }
 0x344   : > { %v578_v38 = vmul.f32 %v576_v34, %v572_v37 }
 0x345   : > { %v579_v39 = vrot.slane %v577_v36, 4 }
 0x346   : > { %v585_v40 = vrot.slane %v578_v38, 4 }
 0x347   : > { %v580_v41 = vadd.f32 %v579_v39, %v577_v36 }
 0x348   : > { %v586_v42 = vadd.f32 %v585_v40, %v578_v38 }
 0x349   : > { %v581_v43 = vrot.slane %v580_v41, 2 }
 0x34a   : > { %v587_v44 = vrot.slane %v586_v42, 2 }
 0x34b   : > { %v582_v45 = vadd.f32 %v581_v43, %v580_v41 }
 0x34c   : > { %v588_v46 = vadd.f32 %v587_v44, %v586_v42 }
 0x34d   : > { %v583_v47 = vrot.slane %v582_v45, 1 }
 0x34e   : > { %v589_v48 = vrot.slane %v588_v46, 1 }
 0x34f   : > { %v584_v49 = vadd.f32 %v583_v47, %v582_v45 }
 0x350   : > { %v590_v50 = vadd.f32 %v589_v48, %v588_v46 }
 0x352   : > { %v593_v51 = vcombine.low %v584_v49, %v590_v50 }
 0x354   : > { %v595_v52 = vmul.f32 %v593_v51, %v970_v3 }
 0x356   : > { %596 = vst [vmem:[%s271_s15] sm:$0xff] %v595_v52 }
 0x357   : > { %820 = shalt.err (!%p817_p3)
}
 0x358   : > { %s821_s29 = scalar_lea.hbm %s1122_s19, 128  ;;  %s825_s13 = scalar_lea.hbm %s1171_s7, 256 }
 0x359   : > { %p822_p4 = scmp.ne.s32.totalorder %s1122_s19, %s821_s29  ;;  %p826_p9 = scmp.lt.u32.totalorder %s1122_s19, %s1171_s7 }
 0x35a   : > { %p827_p10 = scmp.lt.u32.totalorder %s825_s13, %s821_s29  ;;  %p829_p12 = scmp.lt.u32.totalorder %s821_s29, %s1122_s19 }
 0x35b   : > { %p823_p7 = pnand %p822_p4, %p952_p5 }
 0x35c   : > { %p828_p11 = por %p827_p10, %p826_p9 }
 0x35d   : > { %p824_p8 = pneg %p823_p7 }
 0x35e   : > { %p830_p13 = por %p829_p12, %p828_p11 }
 0x360   : > { %p831_p0 = pnand %p830_p13, %p824_p8 }
 0x362   : > { %834 = shalt.err (!%p831_p0)
}
 0x363   : > { %764 = dma.vmem_to_hbm [thread:$0]  (%p952_p5), %s1124_s16, 128, %s1122_s19, %s598_s20  }
 0x364 PF: > { %p770_p1 = scmp.ge.s32.totalorder %s869_s27, 2  ;;  %s624_s17 = sand.u32 1, %s857_s24  }
 0x365   : > { %s625_s18 = scalar_lea.sflag [#allocation3], %s624_s17 }
 0x366   : > { %p767_p2 = pnand %p770_p1, %p956_p6 }
 0x368   : > { %852 = dma.done.wait (!%p767_p2), %s625_s18, 128  }
 0x369   : > { %854 = vsyncadd (!%p767_p2), %s625_s18, 4294967168  ;;  %p17_p3 = scmp.ge.s32.totalorder %s939_s30, 4   ;;  %s1174_s24 = smov %s861_s25 }
 0x36a   : > { %s1175_s25 = smov %s865_s26  ;;  %s1176_s26 = smov %s950_s10 }
 0x36b   : > { %s1177_s27 = smov %s939_s30  ;;  %19 = sbr.rel (!%p17_p3) target bundleno = 3 (0x3), region = 83 }
 0x372   :  { %630 = vsyncpa [#allocation3], 1 }
 0x373   :  { %632 = vsyncpa [#allocation3 + $0x1], 1 }

</bundles_post_ra>
